<compile_context>
chip_gen: v5e
topology: v5e:2x2
jax: 0.10.0
libtpu: 0.0.40
codegen_flags: <defaults>
</compile_context>

<pallas_src>
import jax
import jax.numpy as jnp
from jax import lax
from jax.experimental import pallas as pl
from jax.experimental.pallas import tpu as pltpu


def _round_up(n: int, m: int) -> int:
    return (n + m - 1) // m * m


def mlp_gate_kernel(x_ref, w1_ref, b1_ref, w2_ref, b2_ref, o_ref):
    # Layer 1: Linear(512 -> 10, zero-padded to 128) + ReLU on the MXU,
    # f32 accumulation.  Padded hidden columns stay exactly zero.
    h = jnp.dot(x_ref[...], w1_ref[...], preferred_element_type=jnp.float32)
    h = jnp.maximum(h + b1_ref[...], 0.0)                     # (TB, 128) f32

    # Layer 2: Linear(10 -> 1) expressed as dot_general(w2_pad, h) contracting
    # the padded hidden axis (the q @ k^T pattern).  The batch lands on the
    # result's lane axis -> lane-dense output.  w2_ref is (8, 128) with only
    # row 0 populated, so row 0 of y holds the real result.
    y = lax.dot_general(w2_ref[...], h, (((1,), (1,)), ((), ())),
                        preferred_element_type=jnp.float32)   # (8, TB)
    y = y[0:1, :] + b2_ref[...]                               # (1, TB)

    # Sigmoid epilogue (EUP), lane-dense store.
    o_ref[...] = jax.nn.sigmoid(y).reshape(o_ref.shape)


def gate_forward(x, w1, b1, w2, b2, *, block_b: int = 4096):
    """x: [B, 512] -> [B, 1] sigmoid probabilities (float32).

    w1: [512, 10] (input-major), b1: [1, 10],
    w2: [1, 10] (PyTorch layout of the 10->1 weight), b2: [1, 1].
    """
    B, D = x.shape
    assert D == 512, f"expected 512 input features, got {D}"
    H, HP = 10, 128  # true hidden width, hidden width padded to one lane tile

    # Batch tile: multiple of 128 (lane-dense output), no larger than needed.
    block_b = max(128, _round_up(block_b, 128))
    TB = min(block_b, _round_up(B, 128))
    G = pl.cdiv(B, TB)

    # Zero-pad the tiny weights once (tiny; padded columns contribute nothing
    # through ReLU / the layer-2 contraction).  x itself is NOT touched.
    w1p = jnp.zeros((D, HP), x.dtype).at[:, :H].set(w1.astype(x.dtype))
    b1p = jnp.zeros((1, HP), jnp.float32).at[:, :H].set(b1.astype(jnp.float32))
    w2p = jnp.zeros((8, HP), jnp.float32).at[0, :H].set(
        w2.reshape(-1).astype(jnp.float32))
    b2p = b2.reshape(1, 1).astype(jnp.float32)

    cost = pl.CostEstimate(
        flops=2 * B * D * H + 2 * B * HP,
        transcendentals=B,
        bytes_accessed=B * D * x.dtype.itemsize + B * 4
        + (D * HP + 2 * HP + 1) * 4,
    )

    out = pl.pallas_call(
        mlp_gate_kernel,
        out_shape=jax.ShapeDtypeStruct((G, 1, TB), jnp.float32),
        grid_spec=pltpu.PrefetchScalarGridSpec(
            num_scalar_prefetch=0,
            grid=(G,),
            in_specs=[
                pl.BlockSpec((TB, D), lambda i: (i, 0)),   # x: batch-tiled
                pl.BlockSpec((D, HP), lambda i: (0, 0)),   # w1 (padded): resident
                pl.BlockSpec((1, HP), lambda i: (0, 0)),   # b1 (padded): resident
                pl.BlockSpec((8, HP), lambda i: (0, 0)),   # w2 (padded): resident
                pl.BlockSpec((1, 1), lambda i: (0, 0)),    # b2: resident
            ],
            out_specs=pl.BlockSpec((1, 1, TB), lambda i: (i, 0, 0)),
        ),
        compiler_params=pltpu.CompilerParams(
            dimension_semantics=("parallel",),
            vmem_limit_bytes=32 * 1024 * 1024,
        ),
        cost_estimate=cost,
    )(x, w1p, b1p, w2p, b2p)

    # (G, 1, TB) row-major flatten: element (g, 0, c) == batch row g*TB + c.
    return out.reshape(-1, 1)[:B]


if __name__ == "__main__":
    key = jax.random.PRNGKey(0)
    kx, k1, k2, k3, k4 = jax.random.split(key, 5)

    B, D, H = 512, 512, 10
    x = jax.random.normal(kx, (B, D), jnp.float32)
    lim1 = 1.0 / (D ** 0.5)
    lim2 = 1.0 / (H ** 0.5)
    w1 = jax.random.uniform(k1, (D, H), jnp.float32, -lim1, lim1)
    b1 = jax.random.uniform(k2, (1, H), jnp.float32, -lim1, lim1)
    w2 = jax.random.uniform(k3, (1, H), jnp.float32, -lim2, lim2)
    b2 = jax.random.uniform(k4, (1, 1), jnp.float32, -lim2, lim2)

    # block_b=128 -> 4 grid steps: exercises batch tiling, resident weights,
    # and the lane-dense output path across multiple blocks.
    out = jax.block_until_ready(gate_forward(x, w1, b1, w2, b2, block_b=128))

    # Plain-JAX reference (PyTorch semantics; w2 stored as the (1, 10) weight).
    h_ref = jnp.maximum(x @ w1 + b1, 0.0)
    y_ref = jax.nn.sigmoid(h_ref @ w2.T + b2)

    assert out.shape == (B, 1), out.shape
    max_err = float(jnp.max(jnp.abs(out - y_ref)))
    # Tolerance covers MXU default-precision f32 matmul vs the XLA reference;
    # any structural bug (wrong lane mapping, wrong slice) would be >> this.
    assert max_err < 2e-3, f"mismatch vs reference: max_err={max_err}"
    print("KERNEL_OK")
</pallas_src>

<mosaic_0001>
module attributes {stable_mosaic.version = 11 : i64} {
  func.func @mlp_gate_kernel(%arg0: i32, %arg1: memref<128x512xf32, #tpu.memory_space<vmem>>, %arg2: memref<512x128xf32, #tpu.memory_space<vmem>>, %arg3: memref<1x128xf32, #tpu.memory_space<vmem>>, %arg4: memref<8x128xf32, #tpu.memory_space<vmem>>, %arg5: memref<1x1xf32, #tpu.memory_space<vmem>>, %arg6: memref<1x1x128xf32, #tpu.memory_space<vmem>>) attributes {dimension_semantics = [#tpu.dimension_semantics<parallel>], iteration_bounds = array<i64: 4>, scalar_prefetch = 0 : i64, scratch_operands = 0 : i64, tpu.core_type = #tpu.core_type<tc>, window_params = [{transform_indices = @transform_0, window_bounds = array<i64: 128, 512>}, {pipeline_mode = #tpu.pipeline_mode<synchronous>, transform_indices = @transform_1, window_bounds = array<i64: 512, 128>}, {pipeline_mode = #tpu.pipeline_mode<synchronous>, transform_indices = @transform_2, window_bounds = array<i64: 1, 128>}, {pipeline_mode = #tpu.pipeline_mode<synchronous>, transform_indices = @transform_3, window_bounds = array<i64: 8, 128>}, {pipeline_mode = #tpu.pipeline_mode<synchronous>, transform_indices = @transform_4, window_bounds = array<i64: 1, 1>}, {transform_indices = @transform_5, window_bounds = array<i64: 1, 1, 128>}]} {
    %c0 = arith.constant 0 : index
    %c0_0 = arith.constant 0 : index
    %0 = vector.load %arg1[%c0, %c0_0] : memref<128x512xf32, #tpu.memory_space<vmem>>, vector<128x512xf32>
    %c0_1 = arith.constant 0 : index
    %c0_2 = arith.constant 0 : index
    %1 = vector.load %arg2[%c0_1, %c0_2] : memref<512x128xf32, #tpu.memory_space<vmem>>, vector<512x128xf32>
    %cst = arith.constant dense<0.000000e+00> : vector<128x128xf32>
    %2 = tpu.matmul %0, %1, %cst {dimension_numbers = #tpu.dot_dimension_numbers<[1], [0], [0], [1], [0, 0, 1, 1], [], []>} : vector<128x512xf32>, vector<512x128xf32>, vector<128x128xf32> -> vector<128x128xf32>
    %c0_3 = arith.constant 0 : index
    %c0_4 = arith.constant 0 : index
    %3 = vector.load %arg3[%c0_3, %c0_4] : memref<1x128xf32, #tpu.memory_space<vmem>>, vector<1x128xf32>
    %4 = vector.broadcast %3 : vector<1x128xf32> to vector<128x128xf32>
    %5 = arith.addf %2, %4 : vector<128x128xf32>
    %cst_5 = arith.constant 0.000000e+00 : f32
    %6 = vector.broadcast %cst_5 : f32 to vector<128x128xf32>
    %7 = arith.maximumf %5, %6 : vector<128x128xf32>
    %c0_6 = arith.constant 0 : index
    %c0_7 = arith.constant 0 : index
    %8 = vector.load %arg4[%c0_6, %c0_7] : memref<8x128xf32, #tpu.memory_space<vmem>>, vector<8x128xf32>
    %cst_8 = arith.constant dense<0.000000e+00> : vector<8x128xf32>
    %9 = tpu.matmul %8, %7, %cst_8 {dimension_numbers = #tpu.dot_dimension_numbers<[1], [1], [0], [0], [0, 0, 1, 0], [], []>} : vector<8x128xf32>, vector<128x128xf32>, vector<8x128xf32> -> vector<8x128xf32>
    %10 = vector.extract_strided_slice %9 {offsets = [0, 0], sizes = [1, 128], strides = [1, 1]} : vector<8x128xf32> to vector<1x128xf32>
    %c0_9 = arith.constant 0 : index
    %c0_10 = arith.constant 0 : index
    %11 = vector.load %arg5[%c0_9, %c0_10] : memref<1x1xf32, #tpu.memory_space<vmem>>, vector<1x1xf32>
    %12 = vector.broadcast %11 : vector<1x1xf32> to vector<1x128xf32>
    %13 = arith.addf %10, %12 : vector<1x128xf32>
    %14 = arith.negf %13 : vector<1x128xf32>
    %15 = math.exp %14 : vector<1x128xf32>
    %cst_11 = arith.constant 1.000000e+00 : f32
    %16 = vector.broadcast %cst_11 : f32 to vector<1x128xf32>
    %17 = arith.addf %16, %15 : vector<1x128xf32>
    %18 = arith.divf %16, %17 : vector<1x128xf32>
    %19 = vector.shape_cast %18 : vector<1x128xf32> to vector<1x1x128xf32>
    %c0_12 = arith.constant 0 : index
    %c0_13 = arith.constant 0 : index
    %c0_14 = arith.constant 0 : index
    %20 = vector.load %arg6[%c0_12, %c0_13, %c0_14] : memref<1x1x128xf32, #tpu.memory_space<vmem>>, vector<1x1x128xf32>
    tpu.vector_store %arg6[%c0_12, %c0_13, %c0_14], %19 {strides = array<i32>} : memref<1x1x128xf32, #tpu.memory_space<vmem>>, vector<1x1x128xf32>,
    return
  }
  func.func @transform_0(%arg0: i32) -> (i32, i32) {
    %c0_i32 = arith.constant 0 : i32
    %c0_i32_0 = arith.constant 0 : i32
    return %arg0, %c0_i32 : i32, i32
  }
  func.func @transform_1(%arg0: i32) -> (i32, i32) {
    %c0_i32 = arith.constant 0 : i32
    %c0_i32_0 = arith.constant 0 : i32
    %c0_i32_1 = arith.constant 0 : i32
    return %c0_i32, %c0_i32_0 : i32, i32
  }
  func.func @transform_2(%arg0: i32) -> (i32, i32) {
    %c0_i32 = arith.constant 0 : i32
    %c0_i32_0 = arith.constant 0 : i32
    %c0_i32_1 = arith.constant 0 : i32
    return %c0_i32, %c0_i32_0 : i32, i32
  }
  func.func @transform_3(%arg0: i32) -> (i32, i32) {
    %c0_i32 = arith.constant 0 : i32
    %c0_i32_0 = arith.constant 0 : i32
    %c0_i32_1 = arith.constant 0 : i32
    return %c0_i32, %c0_i32_0 : i32, i32
  }
  func.func @transform_4(%arg0: i32) -> (i32, i32) {
    %c0_i32 = arith.constant 0 : i32
    %c0_i32_0 = arith.constant 0 : i32
    %c0_i32_1 = arith.constant 0 : i32
    return %c0_i32, %c0_i32_0 : i32, i32
  }
  func.func @transform_5(%arg0: i32) -> (i32, i32, i32) {
    %c0_i32 = arith.constant 0 : i32
    %c0_i32_0 = arith.constant 0 : i32
    %c0_i32_1 = arith.constant 0 : i32
    return %arg0, %c0_i32, %c0_i32_0 : i32, i32, i32
  }
}

</mosaic_0001>

<bundles_post_ra>
// kernel: tpu_custom_call.1
= control target key start
LH: loop header
LB: loop body
LE: loop exit
PB: predicated region body
PF: predicated region fallthrough
CT: control target
= control target key end

     0   :  { %s1386_s0 = inlined_call_operand.hbm [shape: f32[512,512], index: 0, kind: input, shape index: {}]   ;;  %s1387_s1 = inlined_call_operand.hbm [shape: f32[512,128], index: 1, kind: input, shape index: {}]   ;;  %s1388_s2 = inlined_call_operand.vmem [shape: f32[1,128], index: 2, kind: input, shape index: {}]   ;;  %s1389_s3 = inlined_call_operand.hbm [shape: f32[8,128], index: 3, kind: input, shape index: {}]   ;;  %s1390_s4 = inlined_call_operand.<no memory space> [shape: f32[1,1], index: 4, kind: input, shape index: {}]   ;;  %s1391_s5 = inlined_call_operand.hbm [shape: f32[4,1,128], index: 5, kind: output, shape index: {}]  }
   0x1   :  { %v10_v0 = vstv %s1390_s4 }
   0x2   :  { %11 = vst [vmem:[#allocation2] sm:$0x1] %v10_v0 }
   0x3   :  { %12 = vsyncpa [#allocation4], 0 }
   0x4   :  { %14 = vsyncpa [#allocation4 + $0x1], 0 }
   0x5   :  { %15 = vsyncpa [#allocation7], 0 }
   0x6   :  { %16 = vsyncpa [#allocation5], 0 }
   0x7   :  { %18 = vsyncpa [#allocation5 + $0x1], 0  ;;  %s1132_s20 = smov 0   ;;  %s1134_s21 = smov 0  }
   0x8   :  { %s1136_s22 = smov 0   ;;  %s1138_s23 = smov 0  }
   0x9 LB: > { %s1153_s4 = sadd.s32 4294967295, %s1090_s23   ;;  %s834_s24 = sadd.s32 4294967294, %s1090_s23   ;;  %s1090_s23 = sphi %s1138_s23, %s1400_s23   ;;  %s1086_s22 = sphi %s1136_s22, %s1399_s22   ;;  %s1082_s21 = sphi %s1134_s21, %s1398_s21   ;;  %s1078_s20 = sphi %s1132_s20, %s1397_s20  }
   0xa   : > { %p44_p0 = scmp.ne.s32.totalorder %s1082_s21, %s1078_s20  ;;  %p45_p1 = scmp.eq.s32.totalorder %s1153_s4, 0 }
   0xb   : > { %p152_p2 = scmp.eq.s32.totalorder %s1153_s4, 3  ;;  %p158_p3 = scmp.eq.s32.totalorder %s834_s24, 3 }
   0xc   : > { %p1162_p4 = por %p45_p1, %p44_p0  ;;  %p835_p5 = scmp.ge.s32.totalorder %s1090_s23, 1 }
   0xd   : > { %p1167_p6 = por %p158_p3, %p44_p0  ;;  %p165_p7 = scmp.lt.s32.totalorder %s1090_s23, 5 }
   0xe   : > { %s176_s29 = sshll.u32 %s1387_s1, 4  ;;  %s1092_s6 = smov [#allocation6]   ;;  %s177_s29 = int_to_ptr.hbm [resolvable:$true] %s176_s29 }
   0xf   : > { %p1175_p8 = pnand %p835_p5, %p165_p7  ;;  %s178_s7 = sshll.u32 %s1092_s6, 4  ;;  %s179_s7 = int_to_ptr.vmem [resolvable:$true] %s178_s7 }
  0x10   : > { %s194_s10 = sshll.u32 %s1389_s3, 4  ;;  %s1093_s11 = smov 128   ;;  %s195_s10 = int_to_ptr.hbm [resolvable:$true] %s194_s10 }
  0x11   : > { %p864_p9 = pneg %p1175_p8  ;;  %s1094_s12 = smov 8  }
  0x12   : > { %s1095_s13 = smov [#allocation8]   ;;  %s1187_s15 = sadd.s32 1, %s1090_s23  }
  0x13   : > { %p865_p10 = pnand %p864_p9, %p45_p1  ;;  %s196_s14 = sshll.u32 %s1095_s13, 4  ;;  %s197_s14 = int_to_ptr.vmem [resolvable:$true] %s196_s14 }
  0x14   : > { %s31_s16 = sadd.s32 1, %s1086_s22  ;;  %s28_s17 = ssub.s32 %s1090_s23, %s1187_s15 }
  0x15   : > { %867 = dma.hbm_to_vmem [thread:$0]  (!%p865_p10), %s177_s29, 8192, %s179_s7, [#allocation7], %s1093_s11, %s1093_s11, %s1094_s12  }
  0x16   : > { %870 = dma.hbm_to_vmem [thread:$0]  (!%p865_p10), %s195_s10, 128, %s197_s14, [#allocation7]  }
  0x17   : > { %p38_p11 = scmp.ne.s32.totalorder %s1086_s22, %s1082_s21  ;;  %p29_p12 = scmp.eq.s32.totalorder %s28_s17, 0 }
  0x18   : > { %p39_p13 = scmp.eq.s32.totalorder %s1090_s23, 0  ;;  %p881_p3 = scmp.lt.s32.totalorder %s1090_s23, 4 }
  0x19   : > { %p1197_p0 = por %p152_p2, %p38_p11  ;;  %s210_s24 = sand.u32 1, %s1086_s22  }
  0x1a   : > { %s1203_s19 = scalar_select %p29_p12, %s1086_s22, %s31_s16  }
  0x1b   : > { %p40_p5 = por %p39_p13, %p38_p11  ;;  %s839_s27 = sshll.u32 %s210_s24, 9 }
  0x1c   : > { %s851_s28 = sshll.u32 %s1090_s23, 9  ;;  %s214_s8 = scalar_lea.vmem [#allocation3], %s839_s27 }
  0x1d   : > { %s220_s7 = scalar_lea.hbm %s1386_s0, %s851_s28  ;;  %s223_s9 = sshll.u32 %s214_s8, 4  ;;  %s224_s9 = int_to_ptr.vmem [resolvable:$true] %s223_s9 }
  0x1e   : > { %s221_s10 = sshll.u32 %s220_s7, 4  ;;  %p1210_p2 = pnand %p881_p3, %p40_p5  ;;  %s222_s10 = int_to_ptr.hbm [resolvable:$true] %s221_s10 }
  0x1f   : > { %s211_s12 = scalar_lea.sflag [#allocation4], %s210_s24  ;;  %s990_s13 = sshra.s32 %s222_s10, 4  ;;  %s991_s13 = int_to_ptr.hbm [resolvable:$true] %s990_s13 }
  0x20   : > { %s992_s14 = scalar_lea.hbm %s991_s13, 512  ;;  %p994_p9 = pneg %p1210_p2 }
  0x21   : > { %p993_p7 = scmp.ne.s32.totalorder %s991_s13, %s992_s14  ;;  %s997_s27 = scalar_lea.hbm %s1386_s0, 2048 }
  0x22   : > { %p998_p12 = scmp.lt.s32.totalorder %s991_s13, %s1386_s0  ;;  %p999_p13 = scmp.lt.s32.totalorder %s997_s27, %s992_s14 }
  0x23   : > { %p995_p10 = pnand %p994_p9, %p993_p7 }
  0x24   : > { %p1000_p3 = por %p999_p13, %p998_p12 }
  0x25   : > { %p996_p11 = pneg %p995_p10 }
  0x27   : > { %p1001_p5 = pnand %p1000_p3, %p996_p11 }
  0x29   : > { %1004 = shalt.err (!%p1001_p5)
}
  0x2a   : > { %s1096_s24 = smov 512   ;;  %s1097_s6 = smov 32  }
  0x2b   : > { %874 = dma.hbm_to_vmem [thread:$0]  (!%p1210_p2), %s222_s10, 8192, %s224_s9, %s211_s12, %s1096_s24, %s1096_s24, %s1097_s6  }
  0x2c   : > { %235 = sbr.rel (%p1175_p8) target bundleno = 565 (0x235), region = 40  ;;  %s1227_s7 = sand.u32 (!%p1175_p8), 1, %s1082_s21  }
  0x2d   : > { %s844_s8 = sshll.u32 (!%p1175_p8), %s1227_s7, 9  ;;  %s238_s13 = scalar_lea.sflag (!%p1175_p8), [#allocation4], %s1227_s7 }
  0x2e   : > { %s1231_s14 = scalar_lea.vmem (!%p1175_p8), [#allocation3], %s844_s8 }
  0x31   : > { %1065 = dma.done.wait (%p1162_p4), %s238_s13, 8192  }
  0x32   : > { %1067 = vsyncadd (%p1162_p4), %s238_s13, 4294959104 }
  0x33   : > { %1069 = dma.done.wait (%p45_p1), [#allocation7], 8320  }
  0x34   : > { %1071 = vsyncadd (%p45_p1), [#allocation7], 4294958976  ;;  %v390_v1 = vld [vmem:[#allocation6 + $0x178] sm:$0xff]  ;;  %v389_v3 = vld [vmem:[#allocation6 + $0x170] sm:$0xff]  ;;  %s745_s11 = scalar_lea.hbm %s1391_s5, %s1153_s4  ;;  %s277_s12 = scalar_lea.vmem [#allocation9], %s1227_s7 }
  0x35   : > { %v358_v2 = vld [vmem:[#allocation6 + $0x78] sm:$0xff]  ;;  %541 = vmatpush.msra.mxu2 %v390_v1  ;;  %v357_v5 = vld [vmem:[#allocation6 + $0x70] sm:$0xff]  ;;  %v388_v7 = vld [vmem:[#allocation6 + $0x168] sm:$0xff]  ;;  %s747_s16 = sshll.u32 %s277_s12, 4  ;;  %s749_s17 = sshll.u32 %s745_s11, 4  ;;  %s748_s16 = int_to_ptr.vmem [resolvable:$true] %s747_s16  ;;  %s750_s17 = int_to_ptr.hbm [resolvable:$true] %s749_s17 }
  0x36   : > { %411 = vmatpush.msra.mxu0 %v358_v2  ;;  %v406_v4 = vld [vmem:[#allocation6 + $0x1f8] sm:$0xff]  ;;  %v405_v8 = vld [vmem:[#allocation6 + $0x1f0] sm:$0xff]  ;;  %v356_v9 = vld [vmem:[#allocation6 + $0x68] sm:$0xff]  ;;  %s737_s4 = scalar_lea.sflag [#allocation5], %s1227_s7  ;;  %s1034_s27 = sshra.s32 %s750_s17, 4  ;;  %s1035_s27 = int_to_ptr.hbm [resolvable:$true] %s1034_s27 }
  0x37   : > { %v374_v6 = vld [vmem:[#allocation6 + $0xf8] sm:$0xff]  ;;  %606 = vmatpush.msra.mxu3 %v406_v4  ;;  %542 = vmatpush.msra.mxu2 %v389_v3  ;;  %v373_v10 = vld [vmem:[#allocation6 + $0xf0] sm:$0xff]  ;;  %v404_v11 = vld [vmem:[#allocation6 + $0x1e8] sm:$0xff]  ;;  %s1036_s28 = scalar_lea.hbm %s1035_s27, 1  ;;  %s1040_s6 = scalar_lea.hbm %s1391_s5, 4 }
  0x38   : > { %476 = vmatpush.msra.mxu1 %v374_v6  ;;  %412 = vmatpush.msra.mxu0 %v357_v5  ;;  %v387_v12 = vld [vmem:[#allocation6 + $0x160] sm:$0xff]  ;;  %v372_v14 = vld [vmem:[#allocation6 + $0xe8] sm:$0xff]  ;;  %v386_v17 = vld [vmem:[#allocation6 + $0x158] sm:$0xff]  ;;  %p1037_p1 = scmp.ne.s32.totalorder %s1035_s27, %s1036_s28  ;;  %p1041_p2 = scmp.lt.s32.totalorder %s1035_s27, %s1391_s5 }
  0x39   : > { %607 = vmatpush.msra.mxu3 %v405_v8  ;;  %v355_v13 = vld [vmem:[#allocation6 + $0x60] sm:$0xff]  ;;  %543 = vmatpush.msra.mxu2 %v388_v7  ;;  %v354_v18 = vld [vmem:[#allocation6 + $0x58] sm:$0xff]  ;;  %v385_v21 = vld [vmem:[#allocation6 + $0x150] sm:$0xff]  ;;  %p1042_p7 = scmp.lt.s32.totalorder %s1040_s6, %s1036_s28 }
  0x3a   : > { %477 = vmatpush.msra.mxu1 %v373_v10  ;;  %413 = vmatpush.msra.mxu0 %v356_v9  ;;  %v403_v15 = vld [vmem:[#allocation6 + $0x1e0] sm:$0xff]  ;;  %v402_v19 = vld [vmem:[#allocation6 + $0x1d8] sm:$0xff]  ;;  %v353_v22 = vld [vmem:[#allocation6 + $0x50] sm:$0xff]  ;;  %p1038_p4 = pnand %p1037_p1, %p1197_p0 }
  0x3b   : > { %v371_v16 = vld [vmem:[#allocation6 + $0xe0] sm:$0xff]  ;;  %608 = vmatpush.msra.mxu3 %v404_v11  ;;  %544 = vmatpush.msra.mxu2 %v387_v12  ;;  %v370_v20 = vld [vmem:[#allocation6 + $0xd8] sm:$0xff]  ;;  %v401_v23 = vld [vmem:[#allocation6 + $0x1d0] sm:$0xff]  ;;  %p1043_p9 = por %p1042_p7, %p1041_p2 }
  0x3c   : > { %478 = vmatpush.msra.mxu1 %v372_v14  ;;  %414 = vmatpush.msra.mxu0 %v355_v13  ;;  %v369_v24 = vld [vmem:[#allocation6 + $0xd0] sm:$0xff]  ;;  %v384_v25 = vld [vmem:[#allocation6 + $0x148] sm:$0xff]  ;;  %v383_v29 = vld [vmem:[#allocation6 + $0x140] sm:$0xff]  ;;  %p1039_p8 = pneg %p1038_p4 }
  0x3d   : > { %609 = vmatpush.msra.mxu3 %v403_v15  ;;  %545 = vmatpush.msra.mxu2 %v386_v17  ;;  %v352_v26 = vld [vmem:[#allocation6 + $0x48] sm:$0xff]  ;;  %v351_v30 = vld [vmem:[#allocation6 + $0x40] sm:$0xff]  ;;  %v382_v33 = vld [vmem:[#allocation6 + $0x138] sm:$0xff] }
  0x3e   : > { %479 = vmatpush.msra.mxu1 %v371_v16  ;;  %415 = vmatpush.msra.mxu0 %v354_v18  ;;  %v400_v27 = vld [vmem:[#allocation6 + $0x1c8] sm:$0xff]  ;;  %v399_v31 = vld [vmem:[#allocation6 + $0x1c0] sm:$0xff]  ;;  %v350_v34 = vld [vmem:[#allocation6 + $0x38] sm:$0xff]  ;;  %p1044_p10 = pnand %p1043_p9, %p1039_p8 }
  0x3f   : > { %610 = vmatpush.msra.mxu3 %v402_v19  ;;  %546 = vmatpush.msra.mxu2 %v385_v21  ;;  %v368_v28 = vld [vmem:[#allocation6 + $0xc8] sm:$0xff]  ;;  %v367_v32 = vld [vmem:[#allocation6 + $0xc0] sm:$0xff]  ;;  %v398_v35 = vld [vmem:[#allocation6 + $0x1b8] sm:$0xff] }
  0x40   : > { %480 = vmatpush.msra.mxu1 %v370_v20  ;;  %416 = vmatpush.msra.mxu0 %v353_v22  ;;  %v366_v36 = vld [vmem:[#allocation6 + $0xb8] sm:$0xff]  ;;  %v381_v37 = vld [vmem:[#allocation6 + $0x130] sm:$0xff]  ;;  %v380_v41 = vld [vmem:[#allocation6 + $0x128] sm:$0xff] }
  0x41   : > { %611 = vmatpush.msra.mxu3 %v401_v23  ;;  %547 = vmatpush.msra.mxu2 %v384_v25  ;;  %v349_v38 = vld [vmem:[#allocation6 + $0x30] sm:$0xff]  ;;  %v348_v42 = vld [vmem:[#allocation6 + $0x28] sm:$0xff]  ;;  %v379_v45 = vld [vmem:[#allocation6 + $0x120] sm:$0xff] }
  0x42   : > { %481 = vmatpush.msra.mxu1 %v369_v24  ;;  %417 = vmatpush.msra.mxu0 %v352_v26  ;;  %v397_v39 = vld [vmem:[#allocation6 + $0x1b0] sm:$0xff]  ;;  %v396_v43 = vld [vmem:[#allocation6 + $0x1a8] sm:$0xff]  ;;  %v347_v46 = vld [vmem:[#allocation6 + $0x20] sm:$0xff] }
  0x43   : > { %612 = vmatpush.msra.mxu3 %v400_v27  ;;  %548 = vmatpush.msra.mxu2 %v383_v29  ;;  %v365_v40 = vld [vmem:[#allocation6 + $0xb0] sm:$0xff]  ;;  %v364_v44 = vld [vmem:[#allocation6 + $0xa8] sm:$0xff]  ;;  %v395_v47 = vld [vmem:[#allocation6 + $0x1a0] sm:$0xff] }
  0x44   : > { %482 = vmatpush.msra.mxu1 %v368_v28  ;;  %418 = vmatpush.msra.mxu0 %v351_v30  ;;  %v363_v48 = vld [vmem:[#allocation6 + $0xa0] sm:$0xff]  ;;  %v378_v49 = vld [vmem:[#allocation6 + $0x118] sm:$0xff]  ;;  %v377_v53 = vld [vmem:[#allocation6 + $0x110] sm:$0xff] }
  0x45   : > { %613 = vmatpush.msra.mxu3 %v399_v31  ;;  %549 = vmatpush.msra.mxu2 %v382_v33  ;;  %v346_v50 = vld [vmem:[#allocation6 + $0x18] sm:$0xff]  ;;  %v345_v54 = vld [vmem:[#allocation6 + $0x10] sm:$0xff]  ;;  %v376_v57 = vld [vmem:[#allocation6 + $0x108] sm:$0xff] }
  0x46   : > { %483 = vmatpush.msra.mxu1 %v367_v32  ;;  %419 = vmatpush.msra.mxu0 %v350_v34  ;;  %v394_v51 = vld [vmem:[#allocation6 + $0x198] sm:$0xff]  ;;  %v393_v55 = vld [vmem:[#allocation6 + $0x190] sm:$0xff]  ;;  %v344_v58 = vld [vmem:[#allocation6 + $0x8] sm:$0xff] }
  0x47   : > { %614 = vmatpush.msra.mxu3 %v398_v35  ;;  %550 = vmatpush.msra.mxu2 %v381_v37  ;;  %v362_v52 = vld [vmem:[#allocation6 + $0x98] sm:$0xff]  ;;  %v361_v56 = vld [vmem:[#allocation6 + $0x90] sm:$0xff]  ;;  %v392_v59 = vld [vmem:[#allocation6 + $0x188] sm:$0xff] }
  0x48   : > { %484 = vmatpush.msra.mxu1 %v366_v36  ;;  %420 = vmatpush.msra.mxu0 %v349_v38  ;;  %v360_v60 = vld [vmem:[#allocation6 + $0x88] sm:$0xff]  ;;  %v375_v61 = vld [vmem:[#allocation6 + $0x100] sm:$0xff]  ;;  %v281_v63 = vld [vmem:[%s1231_s14 + $0x10] sm:$0xff] }
  0x49   : > { %615 = vmatpush.msra.mxu3 %v397_v39  ;;  %551 = vmatpush.msra.mxu2 %v380_v41  ;;  %v343_v62 = vld [vmem:[#allocation6] sm:$0xff]  ;;  %v282_v2 = vld [vmem:[%s1231_s14 + $0x18] sm:$0xff]  ;;  %v280_v4 = vld [vmem:[%s1231_s14 + $0x8] sm:$0xff] }
  0x4a   : > { %485 = vmatpush.msra.mxu1 %v365_v40  ;;  %421 = vmatpush.msra.mxu0 %v348_v42  ;;  %v391_v0 = vld [vmem:[#allocation6 + $0x180] sm:$0xff]  ;;  %v285_v5 = vld [vmem:[%s1231_s14 + $0x30] sm:$0xff]  ;;  %v286_v7 = vld [vmem:[%s1231_s14 + $0x38] sm:$0xff] }
  0x4b   : > { %616 = vmatpush.msra.mxu3 %v396_v43  ;;  %552 = vmatpush.msra.mxu2 %v379_v45  ;;  %v279_v1 = vld [vmem:[%s1231_s14] sm:$0xff]  ;;  %v284_v8 = vld [vmem:[%s1231_s14 + $0x28] sm:$0xff]  ;;  %v289_v9 = vld [vmem:[%s1231_s14 + $0x50] sm:$0xff] }
  0x4c   : > { %486 = vmatpush.msra.mxu1 %v364_v44  ;;  %422 = vmatpush.msra.mxu0 %v347_v46  ;;  %v359_v3 = vld [vmem:[#allocation6 + $0x80] sm:$0xff]  ;;  %v290_v11 = vld [vmem:[%s1231_s14 + $0x58] sm:$0xff]  ;;  %v288_v12 = vld [vmem:[%s1231_s14 + $0x48] sm:$0xff] }
  0x4d   : > { %617 = vmatpush.msra.mxu3 %v395_v47  ;;  %553 = vmatpush.msra.mxu2 %v378_v49  ;;  %v283_v6 = vld [vmem:[%s1231_s14 + $0x20] sm:$0xff]  ;;  %v293_v13 = vld [vmem:[%s1231_s14 + $0x70] sm:$0xff]  ;;  %v294_v15 = vld [vmem:[%s1231_s14 + $0x78] sm:$0xff] }
  0x4e   : > { %487 = vmatpush.msra.mxu1 %v363_v48  ;;  %423 = vmatpush.msra.mxu0 %v346_v50  ;;  %v287_v10 = vld [vmem:[%s1231_s14 + $0x40] sm:$0xff]  ;;  %v292_v16 = vld [vmem:[%s1231_s14 + $0x68] sm:$0xff]  ;;  %v297_v17 = vld [vmem:[%s1231_s14 + $0x90] sm:$0xff] }
  0x4f   : > { %618 = vmatpush.msra.mxu3 %v394_v51  ;;  %554 = vmatpush.msra.mxu2 %v377_v53  ;;  %v291_v14 = vld [vmem:[%s1231_s14 + $0x60] sm:$0xff]  ;;  %v298_v19 = vld [vmem:[%s1231_s14 + $0x98] sm:$0xff]  ;;  %v296_v20 = vld [vmem:[%s1231_s14 + $0x88] sm:$0xff] }
  0x50   : > { %488 = vmatpush.msra.mxu1 %v362_v52  ;;  %424 = vmatpush.msra.mxu0 %v345_v54  ;;  %v295_v18 = vld [vmem:[%s1231_s14 + $0x80] sm:$0xff]  ;;  %v301_v21 = vld [vmem:[%s1231_s14 + $0xb0] sm:$0xff]  ;;  %v302_v23 = vld [vmem:[%s1231_s14 + $0xb8] sm:$0xff] }
  0x51   : > { %619 = vmatpush.msra.mxu3 %v393_v55  ;;  %555 = vmatpush.msra.mxu2 %v376_v57  ;;  %v299_v22 = vld [vmem:[%s1231_s14 + $0xa0] sm:$0xff]  ;;  %v300_v24 = vld [vmem:[%s1231_s14 + $0xa8] sm:$0xff]  ;;  %v305_v25 = vld [vmem:[%s1231_s14 + $0xd0] sm:$0xff] }
  0x52   : > { %489 = vmatpush.msra.mxu1 %v361_v56  ;;  %425 = vmatpush.msra.mxu0 %v344_v58  ;;  %v303_v26 = vld [vmem:[%s1231_s14 + $0xc0] sm:$0xff]  ;;  %v306_v27 = vld [vmem:[%s1231_s14 + $0xd8] sm:$0xff]  ;;  %v304_v28 = vld [vmem:[%s1231_s14 + $0xc8] sm:$0xff] }
  0x53   : > { %620 = vmatpush.msra.mxu3 %v392_v59  ;;  %556 = vmatpush.msra.mxu2 %v375_v61  ;;  %v309_v29 = vld [vmem:[%s1231_s14 + $0xf0] sm:$0xff]  ;;  %v307_v30 = vld [vmem:[%s1231_s14 + $0xe0] sm:$0xff]  ;;  %v310_v31 = vld [vmem:[%s1231_s14 + $0xf8] sm:$0xff] }
  0x54   : > { %490 = vmatpush.msra.mxu1 %v360_v60  ;;  %426 = vmatpush.msra.mxu0 %v343_v62  ;;  %v308_v32 = vld [vmem:[%s1231_s14 + $0xe8] sm:$0xff]  ;;  %v313_v33 = vld [vmem:[%s1231_s14 + $0x110] sm:$0xff]  ;;  %v311_v34 = vld [vmem:[%s1231_s14 + $0x100] sm:$0xff] }
  0x55   : > { %557 = vmatmul.f32.vlgmr.msra.gmra.mxu2 %v281_v63  ;;  %621 = vmatpush.msra.mxu3 %v391_v0  ;;  %v314_v35 = vld [vmem:[%s1231_s14 + $0x118] sm:$0xff]  ;;  %v312_v36 = vld [vmem:[%s1231_s14 + $0x108] sm:$0xff]  ;;  %v317_v37 = vld [vmem:[%s1231_s14 + $0x130] sm:$0xff] }
  0x56   : > { %427 = vmatmul.f32.vlgmr.msra.gmra.mxu0 %v279_v1  ;;  %622 = vmatmul.f32.vlgmr.msra.gmra.mxu3 %v282_v2  ;;  %v315_v38 = vld [vmem:[%s1231_s14 + $0x120] sm:$0xff]  ;;  %v318_v39 = vld [vmem:[%s1231_s14 + $0x138] sm:$0xff]  ;;  %v316_v40 = vld [vmem:[%s1231_s14 + $0x128] sm:$0xff] }
  0x57   : > { %491 = vmatpush.msra.mxu1 %v359_v3  ;;  %v321_v41 = vld [vmem:[%s1231_s14 + $0x150] sm:$0xff]  ;;  %v319_v42 = vld [vmem:[%s1231_s14 + $0x140] sm:$0xff]  ;;  %v322_v43 = vld [vmem:[%s1231_s14 + $0x158] sm:$0xff] }
  0x58   : > { %492 = vmatmul.f32.vlgmr.msra.gmra.mxu1 %v280_v4  ;;  %v320_v44 = vld [vmem:[%s1231_s14 + $0x148] sm:$0xff]  ;;  %v325_v45 = vld [vmem:[%s1231_s14 + $0x170] sm:$0xff]  ;;  %v323_v46 = vld [vmem:[%s1231_s14 + $0x160] sm:$0xff] }
  0x59   : > { %v326_v47 = vld [vmem:[%s1231_s14 + $0x178] sm:$0xff]  ;;  %v324_v48 = vld [vmem:[%s1231_s14 + $0x168] sm:$0xff]  ;;  %v329_v49 = vld [vmem:[%s1231_s14 + $0x190] sm:$0xff] }
  0x5a   : > { %v327_v50 = vld [vmem:[%s1231_s14 + $0x180] sm:$0xff]  ;;  %v330_v51 = vld [vmem:[%s1231_s14 + $0x198] sm:$0xff]  ;;  %v328_v52 = vld [vmem:[%s1231_s14 + $0x188] sm:$0xff] }
  0x5b   : > { %v333_v53 = vld [vmem:[%s1231_s14 + $0x1b0] sm:$0xff]  ;;  %v331_v54 = vld [vmem:[%s1231_s14 + $0x1a0] sm:$0xff]  ;;  %v334_v55 = vld [vmem:[%s1231_s14 + $0x1b8] sm:$0xff] }
  0x5c   : > { %v332_v56 = vld [vmem:[%s1231_s14 + $0x1a8] sm:$0xff]  ;;  %v337_v57 = vld [vmem:[%s1231_s14 + $0x1d0] sm:$0xff]  ;;  %v335_v58 = vld [vmem:[%s1231_s14 + $0x1c0] sm:$0xff] }
  0x5d   : > { %560 = vmatmul.f32.gmra.mxu2 %v285_v5  ;;  %v338_v59 = vld [vmem:[%s1231_s14 + $0x1d8] sm:$0xff]  ;;  %v336_v60 = vld [vmem:[%s1231_s14 + $0x1c8] sm:$0xff]  ;;  %v341_v61 = vld [vmem:[%s1231_s14 + $0x1f0] sm:$0xff] }
  0x5e   : > { %430 = vmatmul.f32.gmra.mxu0 %v283_v6  ;;  %625 = vmatmul.f32.gmra.mxu3 %v286_v7  ;;  %v339_v62 = vld [vmem:[%s1231_s14 + $0x1e0] sm:$0xff]  ;;  %v342_v63 = vld [vmem:[%s1231_s14 + $0x1f8] sm:$0xff]  ;;  %v340_v0 = vld [vmem:[%s1231_s14 + $0x1e8] sm:$0xff] }
  0x5f   : > { %v1308_v1 = vld [vmem:[%s1388_s2] ss:$0 sm:$0xff] }
  0x60   : > { %495 = vmatmul.f32.gmra.mxu1 %v284_v8 }
  0x65   : > { %563 = vmatmul.f32.gmra.mxu2 %v289_v9 }
  0x66   : > { %433 = vmatmul.f32.gmra.mxu0 %v287_v10  ;;  %628 = vmatmul.f32.gmra.mxu3 %v290_v11 }
  0x68   : > { %498 = vmatmul.f32.gmra.mxu1 %v288_v12 }
  0x6d   : > { %566 = vmatmul.f32.gmra.mxu2 %v293_v13 }
  0x6e   : > { %436 = vmatmul.f32.gmra.mxu0 %v291_v14  ;;  %631 = vmatmul.f32.gmra.mxu3 %v294_v15 }
  0x70   : > { %501 = vmatmul.f32.gmra.mxu1 %v292_v16 }
  0x75   : > { %569 = vmatmul.f32.gmra.mxu2 %v297_v17 }
  0x76   : > { %439 = vmatmul.f32.gmra.mxu0 %v295_v18  ;;  %634 = vmatmul.f32.gmra.mxu3 %v298_v19 }
  0x78   : > { %504 = vmatmul.f32.gmra.mxu1 %v296_v20 }
  0x7d   : > { %572 = vmatmul.f32.gmra.mxu2 %v301_v21 }
  0x7e   : > { %442 = vmatmul.f32.gmra.mxu0 %v299_v22  ;;  %637 = vmatmul.f32.gmra.mxu3 %v302_v23 }
  0x80   : > { %507 = vmatmul.f32.gmra.mxu1 %v300_v24 }
  0x85   : > { %575 = vmatmul.f32.gmra.mxu2 %v305_v25 }
  0x86   : > { %445 = vmatmul.f32.gmra.mxu0 %v303_v26  ;;  %640 = vmatmul.f32.gmra.mxu3 %v306_v27 }
  0x88   : > { %510 = vmatmul.f32.gmra.mxu1 %v304_v28 }
  0x8d   : > { %578 = vmatmul.f32.gmra.mxu2 %v309_v29 }
  0x8e   : > { %448 = vmatmul.f32.gmra.mxu0 %v307_v30  ;;  %643 = vmatmul.f32.gmra.mxu3 %v310_v31 }
  0x90   : > { %513 = vmatmul.f32.gmra.mxu1 %v308_v32 }
  0x95   : > { %581 = vmatmul.f32.gmra.mxu2 %v313_v33 }
  0x96   : > { %451 = vmatmul.f32.gmra.mxu0 %v311_v34  ;;  %646 = vmatmul.f32.gmra.mxu3 %v314_v35 }
  0x98   : > { %516 = vmatmul.f32.gmra.mxu1 %v312_v36 }
  0x9d   : > { %584 = vmatmul.f32.gmra.mxu2 %v317_v37 }
  0x9e   : > { %454 = vmatmul.f32.gmra.mxu0 %v315_v38  ;;  %649 = vmatmul.f32.gmra.mxu3 %v318_v39 }
  0xa0   : > { %519 = vmatmul.f32.gmra.mxu1 %v316_v40 }
  0xa5   : > { %587 = vmatmul.f32.gmra.mxu2 %v321_v41 }
  0xa6   : > { %457 = vmatmul.f32.gmra.mxu0 %v319_v42  ;;  %652 = vmatmul.f32.gmra.mxu3 %v322_v43 }
  0xa8   : > { %522 = vmatmul.f32.gmra.mxu1 %v320_v44 }
  0xad   : > { %590 = vmatmul.f32.gmra.mxu2 %v325_v45 }
  0xae   : > { %460 = vmatmul.f32.gmra.mxu0 %v323_v46  ;;  %655 = vmatmul.f32.gmra.mxu3 %v326_v47 }
  0xb0   : > { %525 = vmatmul.f32.gmra.mxu1 %v324_v48 }
  0xb5   : > { %593 = vmatmul.f32.gmra.mxu2 %v329_v49 }
  0xb6   : > { %463 = vmatmul.f32.gmra.mxu0 %v327_v50  ;;  %658 = vmatmul.f32.gmra.mxu3 %v330_v51 }
  0xb8   : > { %528 = vmatmul.f32.gmra.mxu1 %v328_v52 }
  0xbd   : > { %596 = vmatmul.f32.gmra.mxu2 %v333_v53 }
  0xbe   : > { %466 = vmatmul.f32.gmra.mxu0 %v331_v54  ;;  %661 = vmatmul.f32.gmra.mxu3 %v334_v55 }
  0xc0   : > { %531 = vmatmul.f32.gmra.mxu1 %v332_v56 }
  0xc5   : > { %599 = vmatmul.f32.gmra.mxu2 %v337_v57 }
  0xc6   : > { %469 = vmatmul.f32.gmra.mxu0 %v335_v58  ;;  %664 = vmatmul.f32.gmra.mxu3 %v338_v59 }
  0xc8   : > { %534 = vmatmul.f32.gmra.mxu1 %v336_v60 }
  0xcd   : > { %602 = vmatmul.f32.gmra.mxu2 %v341_v61 }
  0xce   : > { %472 = vmatmul.f32.gmra.mxu0 %v339_v62  ;;  %667 = vmatmul.f32.gmra.mxu3 %v342_v63 }
  0xd0   : > { %537 = vmatmul.f32.gmra.mxu1 %v340_v0 }
  0xd3   : > { %v428_v2 = vpop.f32.mrf.mxu0 }
  0xd4   : > { %v429_v3 = vadd.f32 %v1308_v1, %v428_v2 }
  0xd5   : > { %v493_v4 = vpop.f32.mrf.mxu1 }
  0xd6   : > { %v494_v5 = vadd.f32 %v493_v4, %v429_v3 }
  0xd8   : > { %v558_v6 = vpop.f32.mrf.mxu2 }
  0xd9   : > { %v559_v7 = vadd.f32 %v558_v6, %v494_v5  ;;  %v623_v8 = vpop.f32.mrf.mxu3 }
  0xdb   : > { %v1311_v9 = vadd.f32 %v623_v8, %v559_v7  ;;  %v431_v10 = vpop.f32.mrf.mxu0 }
  0xdc   : > { %v432_v11 = vadd.f32 %v1308_v1, %v431_v10 }
  0xdd   : > { %v496_v12 = vpop.f32.mrf.mxu1 }
  0xde   : > { %v497_v13 = vadd.f32 %v496_v12, %v432_v11 }
  0xe0   : > { %v561_v14 = vpop.f32.mrf.mxu2 }
  0xe1   : > { %v562_v15 = vadd.f32 %v561_v14, %v497_v13  ;;  %v626_v16 = vpop.f32.mrf.mxu3 }
  0xe3   : > { %v1314_v17 = vadd.f32 %v626_v16, %v562_v15  ;;  %v434_v18 = vpop.f32.mrf.mxu0 }
  0xe4   : > { %v435_v19 = vadd.f32 %v1308_v1, %v434_v18 }
  0xe5   : > { %v499_v20 = vpop.f32.mrf.mxu1 }
  0xe6   : > { %v500_v21 = vadd.f32 %v499_v20, %v435_v19 }
  0xe8   : > { %v564_v22 = vpop.f32.mrf.mxu2 }
  0xe9   : > { %v565_v23 = vadd.f32 %v564_v22, %v500_v21  ;;  %v629_v24 = vpop.f32.mrf.mxu3 }
  0xeb   : > { %v1317_v25 = vadd.f32 %v629_v24, %v565_v23  ;;  %v437_v26 = vpop.f32.mrf.mxu0 }
  0xec   : > { %v438_v27 = vadd.f32 %v1308_v1, %v437_v26 }
  0xed   : > { %v502_v28 = vpop.f32.mrf.mxu1 }
  0xee   : > { %v503_v29 = vadd.f32 %v502_v28, %v438_v27 }
  0xf0   : > { %v567_v30 = vpop.f32.mrf.mxu2 }
  0xf1   : > { %v568_v31 = vadd.f32 %v567_v30, %v503_v29  ;;  %v632_v32 = vpop.f32.mrf.mxu3 }
  0xf3   : > { %v1320_v33 = vadd.f32 %v632_v32, %v568_v31  ;;  %v440_v34 = vpop.f32.mrf.mxu0 }
  0xf4   : > { %v441_v35 = vadd.f32 %v1308_v1, %v440_v34 }
  0xf5   : > { %v505_v36 = vpop.f32.mrf.mxu1 }
  0xf6   : > { %v506_v37 = vadd.f32 %v505_v36, %v441_v35 }
  0xf8   : > { %v570_v38 = vpop.f32.mrf.mxu2 }
  0xf9   : > { %v571_v39 = vadd.f32 %v570_v38, %v506_v37  ;;  %v635_v40 = vpop.f32.mrf.mxu3 }
  0xfb   : > { %v1323_v41 = vadd.f32 %v635_v40, %v571_v39  ;;  %v443_v42 = vpop.f32.mrf.mxu0 }
  0xfc   : > { %v444_v43 = vadd.f32 %v1308_v1, %v443_v42 }
  0xfd   : > { %v508_v44 = vpop.f32.mrf.mxu1 }
  0xfe   : > { %v509_v45 = vadd.f32 %v508_v44, %v444_v43 }
 0x100   : > { %v573_v46 = vpop.f32.mrf.mxu2 }
 0x101   : > { %v574_v47 = vadd.f32 %v573_v46, %v509_v45  ;;  %v638_v48 = vpop.f32.mrf.mxu3 }
 0x103   : > { %v1326_v49 = vadd.f32 %v638_v48, %v574_v47  ;;  %v446_v50 = vpop.f32.mrf.mxu0 }
 0x104   : > { %v447_v51 = vadd.f32 %v1308_v1, %v446_v50 }
 0x105   : > { %v511_v52 = vpop.f32.mrf.mxu1 }
 0x106   : > { %v512_v53 = vadd.f32 %v511_v52, %v447_v51 }
 0x108   : > { %v576_v54 = vpop.f32.mrf.mxu2 }
 0x109   : > { %v577_v55 = vadd.f32 %v576_v54, %v512_v53  ;;  %v641_v56 = vpop.f32.mrf.mxu3 }
 0x10b   : > { %v1329_v57 = vadd.f32 %v641_v56, %v577_v55  ;;  %v449_v58 = vpop.f32.mrf.mxu0 }
 0x10c   : > { %v450_v59 = vadd.f32 %v1308_v1, %v449_v58 }
 0x10d   : > { %v514_v60 = vpop.f32.mrf.mxu1 }
 0x10e   : > { %v515_v61 = vadd.f32 %v514_v60, %v450_v59 }
 0x110   : > { %v579_v62 = vpop.f32.mrf.mxu2 }
 0x111   : > { %v580_v63 = vadd.f32 %v579_v62, %v515_v61  ;;  %v644_v0 = vpop.f32.mrf.mxu3 }
 0x113   : > { %v1332_v2 = vadd.f32 %v644_v0, %v580_v63  ;;  %v452_v3 = vpop.f32.mrf.mxu0 }
 0x114   : > { %v453_v4 = vadd.f32 %v1308_v1, %v452_v3 }
 0x115   : > { %v517_v5 = vpop.f32.mrf.mxu1 }
 0x116   : > { %v518_v6 = vadd.f32 %v517_v5, %v453_v4 }
 0x118   : > { %v582_v7 = vpop.f32.mrf.mxu2 }
 0x119   : > { %v583_v8 = vadd.f32 %v582_v7, %v518_v6  ;;  %v647_v10 = vpop.f32.mrf.mxu3 }
 0x11b   : > { %v1335_v11 = vadd.f32 %v647_v10, %v583_v8  ;;  %v455_v12 = vpop.f32.mrf.mxu0 }
 0x11c   : > { %v456_v13 = vadd.f32 %v1308_v1, %v455_v12 }
 0x11d   : > { %v520_v14 = vpop.f32.mrf.mxu1 }
 0x11e   : > { %v521_v15 = vadd.f32 %v520_v14, %v456_v13 }
 0x120   : > { %v585_v16 = vpop.f32.mrf.mxu2 }
 0x121   : > { %v586_v18 = vadd.f32 %v585_v16, %v521_v15  ;;  %v650_v19 = vpop.f32.mrf.mxu3 }
 0x123   : > { %v651_v20 = vadd.f32 %v650_v19, %v586_v18  ;;  %v458_v21 = vpop.f32.mrf.mxu0 }
 0x124   : > { %v459_v3 = vadd.f32 %v1308_v1, %v458_v21  ;;  %v679_v21 = vmax.f32 %v1335_v11, 0.0  ;;  %v673_v11 = vmax.f32 %v1317_v25, 0.0 }
 0x125   : > { %v523_v22 = vpop.f32.mrf.mxu1 }
 0x126   : > { %v524_v8 = vadd.f32 %v523_v22, %v459_v3  ;;  %v678_v22 = vmax.f32 %v1332_v2, 0.0  ;;  %v672_v2 = vmax.f32 %v1314_v17, 0.0 }
 0x128   : > { %v588_v23 = vpop.f32.mrf.mxu2 }
 0x129   : > { %v653_v24 = vpop.f32.mrf.mxu3  ;;  %v589_v14 = vadd.f32 %v588_v23, %v524_v8  ;;  %v677_v23 = vmax.f32 %v1329_v57, 0.0  ;;  %v687_v57 = vld [vmem:[#allocation8] sm:$0xff] }
 0x12b   : > { %v461_v26 = vpop.f32.mrf.mxu0  ;;  %v654_v18 = vadd.f32 %v653_v24, %v589_v14  ;;  %v676_v24 = vmax.f32 %v1326_v49, 0.0 }
 0x12c   : > { %v462_v60 = vadd.f32 %v1308_v1, %v461_v26 }
 0x12d   : > { %v526_v27 = vpop.f32.mrf.mxu1  ;;  %v681_v26 = vmax.f32 %v654_v18, 0.0 }
 0x12e   : > { %v527_v4 = vadd.f32 %v526_v27, %v462_v60  ;;  %v708_v27 = vld [vmem:[#allocation2] sm:$0x1] }
 0x130   : > { %v591_v28 = vpop.f32.mrf.mxu2 }
 0x131   : > { %v656_v29 = vpop.f32.mrf.mxu3  ;;  %v592_v10 = vadd.f32 %v591_v28, %v527_v4  ;;  %v1098_v28 = vmov 0  }
 0x132   : > { %924 = vset.pattern.permute.xlu0 %v1098_v28 }
 0x133   : > { %v464_v30 = vpop.f32.mrf.mxu0  ;;  %v657_v15 = vadd.f32 %v656_v29, %v592_v10  ;;  %711 = vperm.xlu0 %924, %v708_v27   ;;  %v675_v29 = vmax.f32 %v1323_v41, 0.0 }
 0x134   : > { %v465_v53 = vadd.f32 %v1308_v1, %v464_v30  ;;  %v671_v30 = vmax.f32 %v1311_v9, 0.0 }
 0x135   : > { %v529_v31 = vpop.f32.mrf.mxu1  ;;  %v682_v19 = vmax.f32 %v657_v15, 0.0 }
 0x136   : > { %v530_v61 = vadd.f32 %v529_v31, %v465_v53 }
 0x138   : > { %v594_v32 = vpop.f32.mrf.mxu2 }
 0x139   : > { %v659_v34 = vpop.f32.mrf.mxu3  ;;  %v595_v5 = vadd.f32 %v594_v32, %v530_v61 }
 0x13b   : > { %v467_v35 = vpop.f32.mrf.mxu0  ;;  %v660_v12 = vadd.f32 %v659_v34, %v595_v5 }
 0x13c   : > { %v468_v47 = vadd.f32 %v1308_v1, %v467_v35 }
 0x13d   : > { %v532_v36 = vpop.f32.mrf.mxu1  ;;  %v683_v16 = vmax.f32 %v660_v12, 0.0 }
 0x13e   : > { %v533_v54 = vadd.f32 %v532_v36, %v468_v47 }
 0x140   : > { %v597_v37 = vpop.f32.mrf.mxu2 }
 0x141   : > { %v662_v38 = vpop.f32.mrf.mxu3  ;;  %v598_v62 = vadd.f32 %v597_v37, %v533_v54 }
 0x143   : > { %v470_v39 = vpop.f32.mrf.mxu0  ;;  %v663_v6 = vadd.f32 %v662_v38, %v598_v62 }
 0x144   : > { %v471_v43 = vadd.f32 %v1308_v1, %v470_v39 }
 0x145   : > { %v535_v40 = vpop.f32.mrf.mxu1  ;;  %v684_v13 = vmax.f32 %v663_v6, 0.0 }
 0x146   : > { %v536_v48 = vadd.f32 %v535_v40, %v471_v43 }
 0x148   : > { %v600_v42 = vpop.f32.mrf.mxu2 }
 0x149   : > { %v665_v44 = vpop.f32.mrf.mxu3  ;;  %v601_v55 = vadd.f32 %v600_v42, %v536_v48 }
 0x14b   : > { %v473_v45 = vpop.f32.mrf.mxu0  ;;  %v666_v63 = vadd.f32 %v665_v44, %v601_v55 }
 0x14c   : > { %v474_v46 = vadd.f32 %v1308_v1, %v473_v45  ;;  %v680_v1 = vmax.f32 %v651_v20, 0.0  ;;  %v674_v20 = vmax.f32 %v1320_v33, 0.0 }
 0x14d   : > { %v538_v50 = vpop.f32.mrf.mxu1  ;;  %v685_v7 = vmax.f32 %v666_v63, 0.0 }
 0x14e   : > { %v539_v51 = vadd.f32 %v538_v50, %v474_v46 }
 0x150   : > { %v603_v52 = vpop.f32.mrf.mxu2 }
 0x151   : > { %v604_v56 = vadd.f32 %v603_v52, %v539_v51  ;;  %v668_v58 = vpop.f32.mrf.mxu3 }
 0x153   : > { %v669_v59 = vadd.f32 %v668_v58, %v604_v56 }
 0x155   : > { %v686_v0 = vmax.f32 %v669_v59, 0.0 }
 0x157   : > { %688 = vmatpush.xpose.msrb.mxu0 %v686_v0 }
 0x15b   : > { %689 = vmatpush.xpose.msrb.mxu0 %v685_v7 }
 0x15f   : > { %690 = vmatpush.xpose.msrb.mxu0 %v684_v13 }
 0x163   : > { %691 = vmatpush.xpose.msrb.mxu0 %v683_v16 }
 0x167   : > { %692 = vmatpush.xpose.msrb.mxu0 %v682_v19 }
 0x16b   : > { %693 = vmatpush.xpose.msrb.mxu0 %v681_v26 }
 0x16f   : > { %694 = vmatpush.xpose.msrb.mxu0 %v680_v1 }
 0x173   : > { %695 = vmatpush.xpose.msrb.mxu0 %v679_v21 }
 0x177   : > { %696 = vmatpush.xpose.msrb.mxu0 %v678_v22 }
 0x17b   : > { %697 = vmatpush.xpose.msrb.mxu0 %v677_v23 }
 0x17f   : > { %698 = vmatpush.xpose.msrb.mxu0 %v676_v24 }
 0x183   : > { %699 = vmatpush.xpose.msrb.mxu0 %v675_v29 }
 0x187   : > { %700 = vmatpush.xpose.msrb.mxu0 %v674_v20 }
 0x18b   : > { %701 = vmatpush.xpose.msrb.mxu0 %v673_v11 }
 0x18f   : > { %702 = vmatpush.xpose.msrb.mxu0 %v672_v2 }
 0x193   : > { %703 = vmatpush.xpose.msrb.mxu0 %v671_v30 }
 0x196   : > { %704 = vmatmul.f32.vlgmr.msrb.gmra.mxu0 %v687_v57 }
 0x1a5   : > { %v712_v49 = vpop.permute.xlu0 %711 }
 0x1a6   : > { %v714_v31 = vperm.slane %v712_v49, 0 }
 0x213   : > { %v705_v41 = vpop.f32.mrf.mxu0 }
 0x214   : > { %v715_v32 = vadd.f32 %v714_v31, %v705_v41 }
 0x216   : > { %v847_v34 = vmul.f32 -1.442695, %v715_v32 }
 0x218   : > { %926 = vpow2.f32 %v847_v34 }
 0x21e   : > { %v927_v33 = vpop.eup %926 }
 0x21f   : > { %v719_v35 = vadd.f32 1.0, %v927_v33 }
 0x221   : > { %928 = vrcp.f32 %v719_v35  ;;  %v731_v9 = vand.u32 2147483648, %v719_v35  ;;  %v729_v38 = vand.u32 2147483647, %v719_v35  ;;  %vm725_vm1 = vweird.f32 %v719_v35 }
 0x223   : > { %v732_v40 = vor.u32 1.1754944e-38, %v731_v9  ;;  %vm730_vm3 = vcmp.eq.f32.partialorder %v729_v38, 8.507059e+37 }
 0x227   : > { %v929_v25 = vpop.eup %928 }
 0x228   : > { %v721_v36 = vmul.f32 %v929_v25, %v719_v35  ;;  %vm726_vm0 = vweird.f32 %v929_v25 }
 0x229   : > { %vm727_vm2 = vmor %vm725_vm1, %vm726_vm0 }
 0x22a   : > { %v722_v17 = vsub.f32 1.0, %v721_v36 }
 0x22c   : > { %v723_v37 = vmul.f32 %v929_v25, %v722_v17 }
 0x22e   : > { %v724_v39 = vadd.f32 %v929_v25, %v723_v37 }
 0x230   : > { %v728_v42 = vsel %vm727_vm2, %v929_v25, %v724_v39 }
 0x231   : > { %v733_v43 = vsel %vm730_vm3, %v732_v40, %v728_v42 }
 0x232   : > { %735 = vst [vmem:[%s277_s12] sm:$0x1] %v733_v43 }
 0x233   : > { %1047 = shalt.err (!%p1044_p10)
}
 0x234   : > { %862 = dma.vmem_to_hbm [thread:$0]  (%p1197_p0), %s748_s16, 16, %s750_s17, %s737_s4  }
 0x235 PF: > { %p884_p11 = scmp.ge.s32.totalorder %s1090_s23, 2  ;;  %s761_s7 = sand.u32 1, %s1078_s20  }
 0x236   : > { %s762_s14 = scalar_lea.sflag [#allocation5], %s761_s7 }
 0x237   : > { %p876_p12 = pnand %p884_p11, %p1167_p6 }
 0x239   : > { %p877_p13 = pneg %p876_p12 }
 0x23b   : > { %1073 = dma.done.wait (%p877_p13), %s762_s14, 16  }
 0x23c   : > { %1075 = vsyncadd (%p877_p13), %s762_s14, 4294967280  ;;  %p21_p3 = scmp.ge.s32.totalorder %s1187_s15, 6   ;;  %s1397_s20 = smov %s1082_s21 }
 0x23d   : > { %s1398_s21 = smov %s1086_s22  ;;  %s1399_s22 = smov %s1203_s19 }
 0x23e   : > { %s1400_s23 = smov %s1187_s15  ;;  %23 = sbr.rel (!%p21_p3) target bundleno = 9 (0x9), region = 93 }
 0x243   :  { %767 = vsyncpa [#allocation4], 1 }
 0x244   :  { %769 = vsyncpa [#allocation4 + $0x1], 1 }
 0x245   :  { %770 = vsyncpa [#allocation7], 1 }
 0x246   :  { %771 = vsyncpa [#allocation5], 1 }
 0x247   :  { %773 = vsyncpa [#allocation5 + $0x1], 1 }

</bundles_post_ra>
